<compile_context>
chip_gen: v7x
topology: tpu7x:2x2x1
jax: 0.10.0
libtpu: 0.0.40
codegen_flags: <defaults>
</compile_context>

<pallas_src>
import functools
import math

import jax
import jax.numpy as jnp
from jax.experimental import pallas as pl
from jax.experimental.pallas import tpu as pltpu


# ----------------------------------------------------------------------------
# helpers
# ----------------------------------------------------------------------------
_NEG_BIG = -1e30  # finite "-inf" used for masking (avoids inf-inf NaNs)


def _round_up(x, m):
    return ((x + m - 1) // m) * m


def _pad_last(x, target):
    """Zero-pad the last (L) axis up to `target` (lane-dense multiple of 128)."""
    L = x.shape[-1]
    if L == target:
        return x
    pad = [(0, 0)] * (x.ndim - 1) + [(0, target - L)]
    return jnp.pad(x, pad)


def _pick_l_tile(L, target):
    """Largest multiple-of-128 tile <= target that divides L."""
    if L % 128 != 0:          # defensive fallback (L is padded to 128 upstream)
        return L
    t = min(L, max(128, (target // 128) * 128))
    while L % t:
        t -= 128
    return t


def _vmem_limit_bytes():
    """Scoped-VMEM budget per generation (v5e/v6e: 128 MiB phys, v7x: 64 MiB)."""
    phys = 64 * 1024 * 1024                       # conservative default (v7x)
    try:
        info = pltpu.get_tpu_info()
        phys = int(getattr(info, "vmem_capacity_bytes", phys))
    except Exception:
        pass
    return int(min(phys * 3 // 4, 100 * 1024 * 1024))


_VMEM_LIMIT = _vmem_limit_bytes()


def _mosaic(n_parallel, n_arbitrary=0):
    sems = ("parallel",) * n_parallel + ("arbitrary",) * n_arbitrary
    return pltpu.CompilerParams(dimension_semantics=sems,
                                vmem_limit_bytes=_VMEM_LIMIT)


def _chan_ln(x, g, b, approx):
    """ChanLayerNorm1D on a (C, Lt) tile; g, b are (C, 1)."""
    mean = jnp.mean(x, axis=0, keepdims=True)
    var = jnp.mean((x - mean) ** 2, axis=0, keepdims=True)       # unbiased=False
    inv = pl.reciprocal(jnp.sqrt(var) + 1e-6, approx=approx)     # EUP, not VALU
    return g * (x - mean) * inv + b


def _l2norm_heads(y, heads, dim_head):
    """Per-head l2norm along dim_head for a (heads*dim_head, Lt) f32 tile.

    Tile-aligned segmented reduction (no per-head slice + concat): square once,
    view as (heads, dim_head, Lt), sublane-reduce over dim_head, single EUP
    rsqrt, broadcast back.  rsqrt(max(ssq, 1e-24)) == 1 / max(||y||, 1e-12),
    i.e. exactly torch.nn.functional.normalize's eps placement.
    """
    Lt = y.shape[-1]
    if dim_head % 8 == 0:                                        # sublane aligned
        y3 = y.reshape(heads, dim_head, Lt)
        ssq = jnp.sum(y3 * y3, axis=1, keepdims=True)            # (H, 1, Lt)
        inv = jax.lax.rsqrt(jnp.maximum(ssq, 1e-24))
        return (y3 * inv).reshape(heads * dim_head, Lt)
    chunks = []                                                  # fallback path
    for h in range(heads):
        yh = y[h * dim_head:(h + 1) * dim_head, :]
        ssq = jnp.sum(yh * yh, axis=0, keepdims=True)
        chunks.append(yh * jax.lax.rsqrt(jnp.maximum(ssq, 1e-24)))
    return jnp.concatenate(chunks, axis=0) if heads > 1 else chunks[0]


# ----------------------------------------------------------------------------
# Kernel 1: q path = ChanLayerNorm + 1x1 conv + per-head l2norm
# ----------------------------------------------------------------------------
def _q_proj_kernel(x_ref, g_ref, b_ref, w_ref, o_ref, *,
                   heads, dim_head, compute_dtype, approx):
    xn = _chan_ln(x_ref[0], g_ref[...], b_ref[...], approx)      # (C, Lt)
    y = jnp.dot(w_ref[...].astype(compute_dtype), xn.astype(compute_dtype),
                preferred_element_type=jnp.float32)              # (O, Lt)
    o_ref[0] = _l2norm_heads(y, heads, dim_head).astype(o_ref.dtype)


def q_project(x, ln_g, ln_b, w, *, heads, dim_head, compute_dtype, approx,
              out_dtype, l_tile_target=1024):
    B, C, L = x.shape
    O = w.shape[0]
    lt = _pick_l_tile(L, l_tile_target)
    kern = functools.partial(_q_proj_kernel, heads=heads, dim_head=dim_head,
                             compute_dtype=compute_dtype, approx=approx)
    osz = jnp.dtype(out_dtype).itemsize
    cost = pl.CostEstimate(
        flops=int(2 * B * O * C * L + 12 * B * C * L + 4 * B * O * L),
        transcendentals=int(B * L * (1 + heads)),
        bytes_accessed=int(4 * (B * C * L + O * C + 2 * C) + osz * B * O * L))
    return pl.pallas_call(
        kern,
        out_shape=jax.ShapeDtypeStruct((B, O, L), out_dtype),
        grid=(B, L // lt),
        in_specs=[
            pl.BlockSpec((1, C, lt), lambda b, l: (b, 0, l)),
            pl.BlockSpec((C, 1), lambda b, l: (0, 0)),
            pl.BlockSpec((C, 1), lambda b, l: (0, 0)),
            pl.BlockSpec((O, C), lambda b, l: (0, 0)),   # weight stays resident
        ],
        out_specs=pl.BlockSpec((1, O, lt), lambda b, l: (b, 0, l)),
        compiler_params=_mosaic(2),
        cost_estimate=cost,
    )(x, ln_g, ln_b, w)


# ----------------------------------------------------------------------------
# Kernel 2: kv path = ChanLayerNorm + fused to_kv 1x1 conv, k l2norm, (k, v)
# ----------------------------------------------------------------------------
def _kv_proj_kernel(x_ref, g_ref, b_ref, w_ref, k_ref, v_ref, *,
                    heads, dim_head, compute_dtype, approx):
    inner = heads * dim_head
    xn = _chan_ln(x_ref[0], g_ref[...], b_ref[...], approx).astype(compute_dtype)
    kv = jnp.dot(w_ref[...].astype(compute_dtype), xn,
                 preferred_element_type=jnp.float32)             # (2*inner, Lt)
    k_ref[0] = _l2norm_heads(kv[:inner, :], heads, dim_head).astype(k_ref.dtype)
    v_ref[0] = kv[inner:, :].astype(v_ref.dtype)


def kv_project(x, ln_g, ln_b, w_kv, *, heads, dim_head, compute_dtype,
               approx, out_dtype, l_tile_target=1024):
    B, C, L = x.shape
    O = w_kv.shape[0] // 2
    lt = _pick_l_tile(L, l_tile_target)
    kern = functools.partial(_kv_proj_kernel, heads=heads, dim_head=dim_head,
                             compute_dtype=compute_dtype, approx=approx)
    osz = jnp.dtype(out_dtype).itemsize
    cost = pl.CostEstimate(
        flops=int(4 * B * O * C * L + 12 * B * C * L + 4 * B * O * L),
        transcendentals=int(B * L * (1 + heads)),
        bytes_accessed=int(4 * (B * C * L + 2 * O * C + 2 * C)
                           + osz * 2 * B * O * L))
    return pl.pallas_call(
        kern,
        out_shape=(jax.ShapeDtypeStruct((B, O, L), out_dtype),
                   jax.ShapeDtypeStruct((B, O, L), out_dtype)),
        grid=(B, L // lt),
        in_specs=[
            pl.BlockSpec((1, C, lt), lambda b, l: (b, 0, l)),
            pl.BlockSpec((C, 1), lambda b, l: (0, 0)),
            pl.BlockSpec((C, 1), lambda b, l: (0, 0)),
            pl.BlockSpec((2 * O, C), lambda b, l: (0, 0)),  # fused kv weight
        ],
        out_specs=(pl.BlockSpec((1, O, lt), lambda b, l: (b, 0, l)),
                   pl.BlockSpec((1, O, lt), lambda b, l: (b, 0, l))),
        compiler_params=_mosaic(2),
        cost_estimate=cost,
    )(x, ln_g, ln_b, w_kv)


# ----------------------------------------------------------------------------
# Kernel 3: attention in (BH, d, L) layout, Lq and Lk tiled into the grid
# ----------------------------------------------------------------------------
def _attn_kernel(q_ref, k_ref, v_ref, o_ref, acc_ref, den_ref, m_ref, *,
                 scale, lk_tile, lk_valid, lk_total, stable,
                 compute_dtype, approx):
    lk_i = pl.program_id(2)

    @pl.when(lk_i == 0)
    def _init():
        acc_ref[...] = jnp.zeros_like(acc_ref)
        den_ref[...] = jnp.zeros_like(den_ref)
        if stable:
            m_ref[...] = jnp.full_like(m_ref, _NEG_BIG)

    q = q_ref[0].astype(compute_dtype)                           # (d, Lq_t)
    k = k_ref[0].astype(compute_dtype)                           # (d, Lk_t)
    v = v_ref[0].astype(compute_dtype)                           # (d, Lk_t)

    # contract over d (sublane axis) for both operands -> (Lq_t, Lk_t), no
    # transpose of q/k needed.
    s = jax.lax.dot_general(q, k, (((0,), (0,)), ((), ())),
                            preferred_element_type=jnp.float32) * scale

    valid = None
    if lk_valid < lk_total:   # static: mask padded / duplicated key columns
        col = lk_i * lk_tile + jax.lax.broadcasted_iota(jnp.int32, s.shape, 1)
        valid = col < lk_valid

    if stable:
        # gated online-softmax path (kept for safety if l2norm were disabled)
        s_m = s if valid is None else jnp.where(valid, s, _NEG_BIG)
        m_new = jnp.maximum(m_ref[...], jnp.max(s_m, axis=-1, keepdims=True))
        alpha = jnp.exp(m_ref[...] - m_new)
        p = jnp.exp(s - m_new)
        if valid is not None:
            p = jnp.where(valid, p, 0.0)
        den_ref[...] = alpha * den_ref[...] + jnp.sum(p, axis=-1, keepdims=True)
        acc_ref[...] = alpha * acc_ref[...] + jax.lax.dot_general(
            p.astype(compute_dtype), v, (((1,), (1,)), ((), ())),
            preferred_element_type=jnp.float32)                  # (Lq_t, d)
        m_ref[...] = m_new
    else:
        # q/k are per-head l2-normalised and scale = 1/sqrt(d) <= 1, so
        # |s| <= 1 and exp(s) cannot overflow: drop the max-subtraction
        # (saves a cross-lane max reduce and the max->exp serialisation).
        p = jnp.exp(s)
        if valid is not None:
            p = jnp.where(valid, p, 0.0)
        den_ref[...] = den_ref[...] + jnp.sum(p, axis=-1, keepdims=True)
        acc_ref[...] = acc_ref[...] + jax.lax.dot_general(
            p.astype(compute_dtype), v, (((1,), (1,)), ((), ())),
            preferred_element_type=jnp.float32)                  # (Lq_t, d)

    @pl.when(lk_i == pl.num_programs(2) - 1)
    def _finish():
        inv = pl.reciprocal(den_ref[...], approx=approx)         # (Lq_t, 1), EUP
        # transpose only the small (Lq_t, d) result, never the (Lq_t, Lk) P tile
        o_ref[0] = (acc_ref[...] * inv).T.astype(o_ref.dtype)


def attention(q, k, v, *, lk_valid, compute_dtype, approx, out_dtype,
              stable_softmax=False, lq_tile_target=512, lk_tile_target=1024):
    BH, d, Lq = q.shape
    _, _, Lk = k.shape
    lq_t = _pick_l_tile(Lq, lq_tile_target)
    lk_t = _pick_l_tile(Lk, lk_tile_target)
    kern = functools.partial(
        _attn_kernel, scale=1.0 / math.sqrt(d), lk_tile=lk_t, lk_valid=lk_valid,
        lk_total=Lk, stable=stable_softmax, compute_dtype=compute_dtype,
        approx=approx)
    osz = jnp.dtype(out_dtype).itemsize
    cost = pl.CostEstimate(
        flops=int(4 * BH * Lq * Lk * d + 8 * BH * Lq * Lk),
        transcendentals=int(BH * Lq * Lk + BH * Lq),
        bytes_accessed=int(q.dtype.itemsize * BH * d * Lq
                           + k.dtype.itemsize * 2 * BH * d * Lk
                           + osz * BH * d * Lq))
    return pl.pallas_call(
        kern,
        out_shape=jax.ShapeDtypeStruct((BH, d, Lq), out_dtype),
        grid=(BH, Lq // lq_t, Lk // lk_t),        # reduction (Lk) axis last
        in_specs=[
            pl.BlockSpec((1, d, lq_t), lambda i, lq, lk: (i, 0, lq)),
            pl.BlockSpec((1, d, lk_t), lambda i, lq, lk: (i, 0, lk)),
            pl.BlockSpec((1, d, lk_t), lambda i, lq, lk: (i, 0, lk)),
        ],
        out_specs=pl.BlockSpec((1, d, lq_t), lambda i, lq, lk: (i, 0, lq)),
        scratch_shapes=[
            pltpu.VMEM((lq_t, d), jnp.float32),   # acc
            pltpu.VMEM((lq_t, 1), jnp.float32),   # denom
            pltpu.VMEM((lq_t, 1), jnp.float32),   # running max (stable path)
        ],
        compiler_params=_mosaic(2, 1),
        cost_estimate=cost,
    )(q, k, v)


# ----------------------------------------------------------------------------
# Kernel 4: to_out 1x1 conv + out_norm + gamma * out + residual
# ----------------------------------------------------------------------------
def _out_kernel(x_ref, qs_ref, w_ref, g_ref, b_ref, gamma_ref, o_ref, *,
                compute_dtype, approx):
    y = jnp.dot(w_ref[...].astype(compute_dtype),
                x_ref[0].astype(compute_dtype),
                preferred_element_type=jnp.float32)              # (D, Lt)
    yn = _chan_ln(y, g_ref[...], b_ref[...], approx)
    o_ref[0] = (gamma_ref[0] * yn + qs_ref[0]).astype(o_ref.dtype)


def out_project(x, query_source, w, ln_g, ln_b, gamma, *, compute_dtype,
                approx, l_tile_target=1024):
    B, I, L = x.shape
    D = w.shape[0]
    lt = _pick_l_tile(L, l_tile_target)
    kern = functools.partial(_out_kernel, compute_dtype=compute_dtype,
                             approx=approx)
    xsz = x.dtype.itemsize
    cost = pl.CostEstimate(
        flops=int(2 * B * D * I * L + 14 * B * D * L),
        transcendentals=int(B * L),
        bytes_accessed=int(xsz * B * I * L + 8 * B * D * L
                           + 4 * (D * I + 2 * D + 1)))
    return pl.pallas_call(
        kern,
        out_shape=jax.ShapeDtypeStruct((B, D, L), jnp.float32),
        grid=(B, L // lt),
        in_specs=[
            pl.BlockSpec((1, I, lt), lambda b, l: (b, 0, l)),
            pl.BlockSpec((1, D, lt), lambda b, l: (b, 0, l)),
            pl.BlockSpec((D, I), lambda b, l: (0, 0)),
            pl.BlockSpec((D, 1), lambda b, l: (0, 0)),
            pl.BlockSpec((D, 1), lambda b, l: (0, 0)),
            pl.BlockSpec(memory_space=pltpu.MemorySpace.SMEM),   # scalar gamma
        ],
        out_specs=pl.BlockSpec((1, D, lt), lambda b, l: (b, 0, l)),
        compiler_params=_mosaic(2),
        cost_estimate=cost,
    )(x, query_source, w, ln_g, ln_b, gamma)


# ----------------------------------------------------------------------------
# DPCA1D forward (Pallas kernels + JAX glue)
# ----------------------------------------------------------------------------
def dpca1d_forward(params, query_source, context, *, heads, dim_head,
                   top_k=-1, use_bf16_matmul=True, stable_softmax=False):
    b, _, L_query = query_source.shape
    _, _, L_context = context.shape
    inner_dim = heads * dim_head
    length_top_k = top_k if top_k > 0 else int(L_context ** 0.5)
    need_select = length_top_k < L_context

    cdt = jnp.bfloat16 if use_bf16_matmul else jnp.float32       # MXU operands
    inter_dt = jnp.bfloat16 if use_bf16_matmul else jnp.float32  # HBM intermediates
    approx = use_bf16_matmul          # fast EUP reciprocal only in the perf path

    # lane-dense padding: every kernel L axis is a multiple of 128
    Lq_pad = _round_up(L_query, 128)
    Lc_pad = _round_up(L_context, 128)
    qs_p = _pad_last(query_source, Lq_pad)
    ctx_p = _pad_last(context, Lc_pad)

    # fused norm + 1x1 conv (+ l2norm); k/v from a single fused weight
    qn = q_project(qs_p, params["qs_ln_g"], params["qs_ln_b"], params["w_q"],
                   heads=heads, dim_head=dim_head, compute_dtype=cdt,
                   approx=approx, out_dtype=inter_dt)
    kn, v = kv_project(ctx_p, params["ctx_ln_g"], params["ctx_ln_b"],
                       params["w_kv"], heads=heads, dim_head=dim_head,
                       compute_dtype=cdt, approx=approx, out_dtype=inter_dt)

    # fold heads: (B, H*d, L) -> (B*H, d, L)  (pure reshape, no transpose/copy)
    def fold(x):
        return x.reshape(b * heads, dim_head, x.shape[-1])

    qn, kn, v = fold(qn), fold(kn), fold(v)

    if need_select:
        # TODO(synk): fold the data-dependent top-k gather into the attention
        # kernel via PrefetchScalarGridSpec (indices as scalar prefetch) to
        # avoid materializing gathered k/v in HBM; kept in plain JAX here.
        q_probe = jnp.sum(qn[:, :, :L_query].astype(jnp.float32), axis=2)
        score = jnp.einsum("bd,bdl->bl", q_probe,
                           jnp.abs(kn).astype(jnp.float32))      # (BH, Lc_pad)
        score = jnp.where(jnp.arange(Lc_pad)[None, :] < L_context,
                          score, -jnp.inf)                       # mask padding
        idx = jax.lax.top_k(score, length_top_k)[1]              # (BH, Ltop)
        lk_pad = _round_up(length_top_k, 128)
        if lk_pad > length_top_k:                                # lane-dense Lk
            idx = jnp.pad(idx, ((0, 0), (0, lk_pad - length_top_k)))
        idx3 = jnp.broadcast_to(idx[:, None, :],
                                (kn.shape[0], dim_head, lk_pad))
        kn = jnp.take_along_axis(kn, idx3, axis=2)
        v = jnp.take_along_axis(v, idx3, axis=2)
        lk_valid = length_top_k          # padded columns masked inside kernel
    else:
        lk_valid = L_context             # padded context columns masked

    # attention directly in (BH, d, L) layout -> (BH, d, Lq_pad)
    out = attention(qn, kn, v, lk_valid=lk_valid, compute_dtype=cdt,
                    approx=approx, out_dtype=inter_dt,
                    stable_softmax=stable_softmax)
    out = out.reshape(b, inner_dim, Lq_pad)                      # pure reshape

    # to_out + out_norm + gamma*out + residual (Pallas)
    # TODO(synk): dropout (dropout_p) not implemented (inference forward, p=0).
    y = out_project(out, qs_p, params["w_out"], params["out_ln_g"],
                    params["out_ln_b"], params["gamma"], compute_dtype=cdt,
                    approx=approx)
    return y[:, :, :L_query]


# ----------------------------------------------------------------------------
# Pure-JAX reference (mirrors the PyTorch forward exactly) for verification
# ----------------------------------------------------------------------------
def _chan_ln_ref(x, g, b):
    mean = jnp.mean(x, axis=1, keepdims=True)
    var = jnp.mean((x - mean) ** 2, axis=1, keepdims=True)
    return g[None] * (x - mean) / (jnp.sqrt(var) + 1e-6) + b[None]


def dpca1d_reference(params, query_source, context, *, heads, dim_head, top_k=-1):
    b, _, L_query = query_source.shape
    _, _, L_context = context.shape
    inner_dim = heads * dim_head
    length_top_k = top_k if top_k > 0 else int(L_context ** 0.5)
    need_select = length_top_k < L_context

    w_k = params["w_kv"][:inner_dim]
    w_v = params["w_kv"][inner_dim:]

    ctx_n = _chan_ln_ref(context, params["ctx_ln_g"], params["ctx_ln_b"])
    qs_n = _chan_ln_ref(query_source, params["qs_ln_g"], params["qs_ln_b"])
    k = jnp.einsum("oc,bcl->bol", w_k, ctx_n)
    v = jnp.einsum("oc,bcl->bol", w_v, ctx_n)
    q = jnp.einsum("oc,bcl->bol", params["w_q"], qs_n)

    def fold(x):
        return x.reshape(b * heads, dim_head, x.shape[-1])

    q, k, v = fold(q), fold(k), fold(v)

    def l2n(t):
        return t / jnp.maximum(jnp.sqrt(jnp.sum(t * t, axis=1, keepdims=True)),
                               1e-12)

    q, k = l2n(q), l2n(k)

    if need_select:
        q_probe = jnp.sum(q, axis=2)                                # (BH, d)
        score = jnp.einsum("bc,bcl->bl", q_probe, jnp.abs(k))
        idx = jax.lax.top_k(score, length_top_k)[1]
        idx3 = jnp.broadcast_to(idx[:, None, :],
                                (k.shape[0], dim_head, length_top_k))
        k = jnp.take_along_axis(k, idx3, axis=2)
        v = jnp.take_along_axis(v, idx3, axis=2)

    s = jnp.einsum("bdq,bdk->bqk", q, k) / math.sqrt(dim_head)
    p = jax.nn.softmax(s, axis=-1)
    out = jnp.einsum("bqk,bdk->bdq", p, v)                          # (BH, d, Lq)
    out = out.reshape(b, inner_dim, L_query)
    out = jnp.einsum("oc,bcl->bol", params["w_out"], out)
    out = _chan_ln_ref(out, params["out_ln_g"], params["out_ln_b"])
    return params["gamma"][0] * out + query_source


# ----------------------------------------------------------------------------
# main
# ----------------------------------------------------------------------------
if __name__ == "__main__":
    dim = 8
    heads = 2
    dim_head = 8
    inner_dim = heads * dim_head
    b, L_query, L_context = 2, 16, 16

    key = jax.random.PRNGKey(0)
    keys = jax.random.split(key, 11)

    params = {
        "ctx_ln_g": 1.0 + 0.1 * jax.random.normal(keys[0], (dim, 1), jnp.float32),
        "ctx_ln_b": 0.1 * jax.random.normal(keys[1], (dim, 1), jnp.float32),
        "qs_ln_g": 1.0 + 0.1 * jax.random.normal(keys[2], (dim, 1), jnp.float32),
        "qs_ln_b": 0.1 * jax.random.normal(keys[3], (dim, 1), jnp.float32),
        "out_ln_g": 1.0 + 0.1 * jax.random.normal(keys[4], (dim, 1), jnp.float32),
        "out_ln_b": 0.1 * jax.random.normal(keys[5], (dim, 1), jnp.float32),
        # to_kv weight kept fused as a single (2*inner_dim, dim) matrix
        # (== torch Conv1d weight before chunk(2, dim=1))
        "w_kv": 0.2 * jax.random.normal(keys[6], (2 * inner_dim, dim), jnp.float32),
        "w_q": 0.2 * jax.random.normal(keys[7], (inner_dim, dim), jnp.float32),
        "w_out": 0.2 * jax.random.normal(keys[8], (dim, inner_dim), jnp.float32),
        # nn.Parameter(torch.zeros(1)); made nonzero so attention contributes.
        "gamma": jnp.full((1,), 0.7, jnp.float32),
    }

    query_source = jax.random.normal(keys[9], (b, dim, L_query), jnp.float32)
    context = jax.random.normal(keys[10], (b, dim, L_query), jnp.float32)

    # ---- exact path: f32 MXU operands/intermediates, exact reciprocals,
    # gated online (stable) softmax, need_select=True (top_k=sqrt(16)=4)
    # -> exercises pruning + key-padding mask + the stable softmax branch.
    ref = dpca1d_reference(params, query_source, context,
                           heads=heads, dim_head=dim_head, top_k=-1)
    out_f32 = dpca1d_forward(params, query_source, context,
                             heads=heads, dim_head=dim_head, top_k=-1,
                             use_bf16_matmul=False, stable_softmax=True)
    out_f32 = jax.block_until_ready(out_f32)
    assert out_f32.shape == (b, dim, L_query)
    assert jnp.allclose(out_f32, ref, atol=1e-4, rtol=1e-4), \
        "f32 mismatch vs reference"

    # ---- perf path: bf16 MXU operands + bf16 intermediates + approx EUP
    # reciprocals + max-free softmax.  Uses top_k == L_context (no pruning) so
    # the check is not sensitive to low-precision ties in the top-k ordering.
    ref_full = dpca1d_reference(params, query_source, context,
                                heads=heads, dim_head=dim_head, top_k=L_context)
    out_bf16 = dpca1d_forward(params, query_source, context,
                              heads=heads, dim_head=dim_head, top_k=L_context,
                              use_bf16_matmul=True, stable_softmax=False)
    out_bf16 = jax.block_until_ready(out_bf16)
    assert jnp.allclose(out_bf16, ref_full, atol=8e-2, rtol=8e-2), \
        "bf16 mismatch vs reference"

    print("KERNEL_OK")
</pallas_src>

<mosaic_0001>
module attributes {stable_mosaic.version = 11 : i64} {
  func.func @_q_proj_kernel(%arg0: i32, %arg1: i32, %arg2: memref<1x8x128xf32, #tpu.memory_space<vmem>>, %arg3: memref<8x1xf32, #tpu.memory_space<vmem>>, %arg4: memref<8x1xf32, #tpu.memory_space<vmem>>, %arg5: memref<16x8xf32, #tpu.memory_space<vmem>>, %arg6: memref<1x16x128xf32, #tpu.memory_space<vmem>>) attributes {dimension_semantics = [#tpu.dimension_semantics<parallel>, #tpu.dimension_semantics<parallel>], iteration_bounds = array<i64: 2, 1>, scalar_prefetch = 0 : i64, scratch_operands = 0 : i64, tpu.core_type = #tpu.core_type<tc>, window_params = [{transform_indices = @transform_0, window_bounds = array<i64: 1, 8, 128>}, {pipeline_mode = #tpu.pipeline_mode<synchronous>, transform_indices = @transform_1, window_bounds = array<i64: 8, 1>}, {pipeline_mode = #tpu.pipeline_mode<synchronous>, transform_indices = @transform_2, window_bounds = array<i64: 8, 1>}, {pipeline_mode = #tpu.pipeline_mode<synchronous>, transform_indices = @transform_3, window_bounds = array<i64: 16, 8>}, {transform_indices = @transform_4, window_bounds = array<i64: 1, 16, 128>}]} {
    %c0 = arith.constant 0 : index
    %c0_0 = arith.constant 0 : index
    %c0_1 = arith.constant 0 : index
    %0 = vector.load %arg2[%c0, %c0_0, %c0_1] : memref<1x8x128xf32, #tpu.memory_space<vmem>>, vector<1x8x128xf32>
    %1 = vector.shape_cast %0 : vector<1x8x128xf32> to vector<8x128xf32>
    %c0_2 = arith.constant 0 : index
    %c0_3 = arith.constant 0 : index
    %2 = vector.load %arg3[%c0_2, %c0_3] : memref<8x1xf32, #tpu.memory_space<vmem>>, vector<8x1xf32>
    %c0_4 = arith.constant 0 : index
    %c0_5 = arith.constant 0 : index
    %3 = vector.load %arg4[%c0_4, %c0_5] : memref<8x1xf32, #tpu.memory_space<vmem>>, vector<8x1xf32>
    %cst = arith.constant dense<0.000000e+00> : vector<128xf32>
    %4 = vector.multi_reduction <add>, %1, %cst [0] : vector<8x128xf32> to vector<128xf32>
    %5 = vector.shape_cast %4 : vector<128xf32> to vector<1x128xf32>
    %cst_6 = arith.constant 8.000000e+00 : f32
    %6 = vector.broadcast %cst_6 : f32 to vector<1x128xf32>
    %7 = arith.divf %5, %6 : vector<1x128xf32>
    %8 = vector.broadcast %7 : vector<1x128xf32> to vector<8x128xf32>
    %9 = arith.subf %1, %8 : vector<8x128xf32>
    %10 = arith.mulf %9, %9 : vector<8x128xf32>
    %cst_7 = arith.constant dense<0.000000e+00> : vector<128xf32>
    %11 = vector.multi_reduction <add>, %10, %cst_7 [0] : vector<8x128xf32> to vector<128xf32>
    %12 = vector.shape_cast %11 : vector<128xf32> to vector<1x128xf32>
    %cst_8 = arith.constant 8.000000e+00 : f32
    %13 = vector.broadcast %cst_8 : f32 to vector<1x128xf32>
    %14 = arith.divf %12, %13 : vector<1x128xf32>
    %15 = math.sqrt %14 : vector<1x128xf32>
    %cst_9 = arith.constant 9.99999997E-7 : f32
    %16 = vector.broadcast %cst_9 : f32 to vector<1x128xf32>
    %17 = arith.addf %15, %16 : vector<1x128xf32>
    %18 = tpu.reciprocal %17 : vector<1x128xf32> -> vector<1x128xf32>
    %19 = vector.broadcast %7 : vector<1x128xf32> to vector<8x128xf32>
    %20 = arith.subf %1, %19 : vector<8x128xf32>
    %21 = vector.broadcast %2 : vector<8x1xf32> to vector<8x128xf32>
    %22 = arith.mulf %21, %20 : vector<8x128xf32>
    %23 = vector.broadcast %18 : vector<1x128xf32> to vector<8x128xf32>
    %24 = arith.mulf %22, %23 : vector<8x128xf32>
    %25 = vector.broadcast %3 : vector<8x1xf32> to vector<8x128xf32>
    %26 = arith.addf %24, %25 : vector<8x128xf32>
    %c0_10 = arith.constant 0 : index
    %c0_11 = arith.constant 0 : index
    %27 = vector.load %arg5[%c0_10, %c0_11] : memref<16x8xf32, #tpu.memory_space<vmem>>, vector<16x8xf32>
    %cst_12 = arith.constant dense<0.000000e+00> : vector<16x128xf32>
    %28 = tpu.matmul %27, %26, %cst_12 {dimension_numbers = #tpu.dot_dimension_numbers<[1], [0], [0], [1], [0, 0, 1, 1], [], []>} : vector<16x8xf32>, vector<8x128xf32>, vector<16x128xf32> -> vector<16x128xf32>
    %29 = vector.shape_cast %28 : vector<16x128xf32> to vector<2x8x128xf32>
    %30 = arith.mulf %29, %29 : vector<2x8x128xf32>
    %cst_13 = arith.constant dense<0.000000e+00> : vector<2x128xf32>
    %31 = vector.multi_reduction <add>, %30, %cst_13 [1] : vector<2x8x128xf32> to vector<2x128xf32>
    %32 = vector.shape_cast %31 : vector<2x128xf32> to vector<2x1x128xf32>
    %cst_14 = arith.constant 1.000000e-24 : f32
    %33 = vector.broadcast %cst_14 : f32 to vector<2x1x128xf32>
    %34 = arith.maximumf %32, %33 : vector<2x1x128xf32>
    %35 = math.rsqrt %34 : vector<2x1x128xf32>
    %36 = vector.broadcast %35 : vector<2x1x128xf32> to vector<2x8x128xf32>
    %37 = arith.mulf %29, %36 : vector<2x8x128xf32>
    %38 = vector.shape_cast %37 : vector<2x8x128xf32> to vector<16x128xf32>
    %c0_15 = arith.constant 0 : index
    %c0_16 = arith.constant 0 : index
    %c0_17 = arith.constant 0 : index
    %39 = vector.load %arg6[%c0_15, %c0_16, %c0_17] : memref<1x16x128xf32, #tpu.memory_space<vmem>>, vector<1x16x128xf32>
    %40 = vector.shape_cast %39 : vector<1x16x128xf32> to vector<16x128xf32>
    %41 = vector.shape_cast %38 : vector<16x128xf32> to vector<1x16x128xf32>
    tpu.vector_store %arg6[%c0_15, %c0_16, %c0_17], %41 {strides = array<i32>} : memref<1x16x128xf32, #tpu.memory_space<vmem>>, vector<1x16x128xf32>,
    return
  }
  func.func @transform_0(%arg0: i32, %arg1: i32) -> (i32, i32, i32) {
    %c0_i32 = arith.constant 0 : i32
    %c0_i32_0 = arith.constant 0 : i32
    return %arg0, %c0_i32, %arg1 : i32, i32, i32
  }
  func.func @transform_1(%arg0: i32, %arg1: i32) -> (i32, i32) {
    %c0_i32 = arith.constant 0 : i32
    %c0_i32_0 = arith.constant 0 : i32
    %c0_i32_1 = arith.constant 0 : i32
    return %c0_i32, %c0_i32_0 : i32, i32
  }
  func.func @transform_2(%arg0: i32, %arg1: i32) -> (i32, i32) {
    %c0_i32 = arith.constant 0 : i32
    %c0_i32_0 = arith.constant 0 : i32
    %c0_i32_1 = arith.constant 0 : i32
    return %c0_i32, %c0_i32_0 : i32, i32
  }
  func.func @transform_3(%arg0: i32, %arg1: i32) -> (i32, i32) {
    %c0_i32 = arith.constant 0 : i32
    %c0_i32_0 = arith.constant 0 : i32
    %c0_i32_1 = arith.constant 0 : i32
    return %c0_i32, %c0_i32_0 : i32, i32
  }
  func.func @transform_4(%arg0: i32, %arg1: i32) -> (i32, i32, i32) {
    %c0_i32 = arith.constant 0 : i32
    %c0_i32_0 = arith.constant 0 : i32
    return %arg0, %c0_i32, %arg1 : i32, i32, i32
  }
}

</mosaic_0001>

<bundles_post_ra>
// kernel: tpu_custom_call.1
= control target key start
LH: loop header
LB: loop body
LE: loop exit
PB: predicated region body
PF: predicated region fallthrough
CT: control target
= control target key end

     0   :  { %9 = vsyncpa [#allocation3], 0  ;;  %s784_s0 = inlined_call_operand.vmem [shape: f32[2,8,128], index: 0, kind: input, shape index: {}]   ;;  %s785_s1 = inlined_call_operand.vmem [shape: f32[8,1], index: 1, kind: input, shape index: {}]   ;;  %s786_s2 = inlined_call_operand.vmem [shape: f32[8,1], index: 2, kind: input, shape index: {}]   ;;  %s787_s3 = inlined_call_operand.vmem [shape: f32[16,8], index: 3, kind: input, shape index: {}]   ;;  %s788_s4 = inlined_call_operand.hbm [shape: f32[2,16,128], index: 4, kind: output, shape index: {}]  }
   0x1   :  { %11 = vsyncpa [#allocation3 + $0x1], 0  ;;  %s655_s15 = smov 0   ;;  %s657_s16 = smov 0  }
   0x2   :  { %s659_s17 = smov 0   ;;  %s661_s18 = smov 0  }
   0x3   :  { %s663_s19 = smov 0   ;;  %s665_s20 = smov 0  }
   0x4 LB: > { %s456_s21 = sadd.s32 4294967295, %s624_s20   ;;  %s457_s22 = sadd.s32 4294967294, %s624_s20   ;;  %s624_s20 = sphi %s665_s20, %s17_s20   ;;  %s620_s19 = sphi %s663_s19, %s795_s19   ;;  %s616_s18 = sphi %s661_s18, %s794_s18   ;;  %s612_s17 = sphi %s659_s17, %s793_s17   ;;  %s608_s16 = sphi %s657_s16, %s792_s16   ;;  %s604_s15 = sphi %s655_s15, %s791_s15  }
   0x5   : > { %s29_s23 = sadd.s32 1, %s620_s19  ;;  %s129_s24 = sadd.s32 1, %s612_s17 }
   0x6   : > { %p31_p0 = scmp.ge.s32.totalorder %s29_s23, 2  ;;  %p139_p1 = scmp.ne.s32.totalorder %s612_s17, %s608_s16 }
   0x7   : > { %p140_p2 = scmp.eq.s32.totalorder %s456_s21, 1  ;;  %p145_p3 = scmp.ne.s32.totalorder %s608_s16, %s604_s15 }
   0x8   : > { %s797_s23 = smov (%p31_p0, %s29_s23), 0  ;;  %p146_p5 = scmp.eq.s32.totalorder %s457_s22, 1 }
   0x9   : > { %p695_p4 = por %p140_p2, %p139_p1  ;;  %s124_s26 = ssub.s32 %s620_s19, %s797_s23 }
   0xa   : > { %p460_p6 = scmp.ge.s32.totalorder %s624_s20, 1  ;;  %p127_p7 = scmp.eq.s32.totalorder %s124_s26, 0 }
   0xb   : > { %p702_p8 = por %p146_p5, %p145_p3  ;;  %p183_p9 = scmp.lt.s32.totalorder %s624_s20, 3 }
   0xc   : > { %s708_s28 = scalar_select %p127_p7, %s612_s17, %s129_s24  }
   0xd   : > { %p184_p10 = pnand %p460_p6, %p183_p9 }
   0xe   : > { %v219_v0 = vld [vmem:[%s785_s1] sm:$0xff] (!%p184_p10)  ;;  %v626_v1 = vmov (!%p184_p10), 0   ;;  %vm262_vm0 = vcmask (!%p184_p10), 64512   ;;  %p211_p11 = scmp.lt.s32.totalorder (!%p184_p10), %s616_s18, 1  ;;  %v261_v33 = vld [vmem:[%s787_s3 + $0x8] sm:$0xff] (!%p184_p10)  ;;  %s208_s22 = sand.u32 (!%p184_p10), 1, %s608_s16  }
   0xf   : > { %187 = sbr.rel (%p184_p10) target bundleno = 409 (0x199), region = 36  ;;  %537 = vset.pattern.permute.xlu0 (!%p184_p10), %v626_v1  ;;  %v220_v2 = vld [vmem:[%s786_s2] sm:$0xff] (!%p184_p10)  ;;  %s461_s24 = sshll.u32 (!%p184_p10), %s208_s22, 4 }
  0x10   : > { %249 = vperm.xlu0 (!%p184_p10), %537, %v219_v0   ;;  %v260_v3 = vld [vmem:[%s787_s3] sm:$0xff] (!%p184_p10)  ;;  %s210_s26 = scalar_lea.vmem (!%p184_p10), [#allocation2], %s461_s24  ;;  %s470_s30 = sshll.u32 (!%p184_p10), %s616_s18, 8 }
  0x11   : > { %476 = vmatprep.mubr.msk.f32.mxu0 (!%p184_p10), %vm262_vm0, %v260_v3  ;;  %s381_s29 = sshll.u32 (!%p184_p10), %s210_s26, 4  ;;  %s736_s7 = scalar_lea.hbm (!%p184_p10), %s788_s4, %s470_s30  ;;  %s731_s29 = int_to_ptr.vmem [resolvable:$true] %s381_s29 }
  0x12   : > { %s738_s8 = scalar_lea.sflag (!%p184_p10), [#allocation3], %s208_s22 }
  0x14   : > { %256 = vperm.xlu0 (!%p184_p10), %537, %v220_v2  }
  0x16   : > { %s212_s9 = scalar_select %p211_p11, %s616_s18, 1 }
  0x17   : > { %s627_s18 = smov [#allocation2]  }
  0x18   : > { %s462_s10 = sshll.u32 %s212_s9, 3  ;;  %s546_s9 = scalar_lea.vmem %s731_s29, 256 }
  0x19   : > { %s217_s13 = scalar_lea.vmem %s784_s0, %s462_s10  ;;  %p547_p12 = scmp.ne.s32.totalorder %s731_s29, %s546_s9 }
  0x1a   : > { %v218_v4 = vld [vmem:[%s217_s13] sm:$0xff]  ;;  %s550_s10 = sshll.u32 %s627_s18, 4  ;;  %s551_s10 = int_to_ptr.vmem [resolvable:$false] %s550_s10 }
  0x1b   : > { %v221_v5 = vrot.slane %v218_v4, 4  ;;  %p548_p13 = pnand %p547_p12, %p695_p4  ;;  %s552_s11 = scalar_lea.vmem %s551_s10, 512 }
  0x1c   : > { %p553_p1 = scmp.lt.s32.totalorder %s731_s29, %s551_s10  ;;  %p554_p2 = scmp.lt.s32.totalorder %s552_s11, %s546_s9 }
  0x1d   : > { %v222_v6 = vadd.f32 %v221_v5, %v218_v4  ;;  %p549_p0 = pneg %p548_p13 }
  0x1e   : > { %p555_p3 = por %p554_p2, %p553_p1 }
  0x1f   : > { %v223_v7 = vrot.slane %v222_v6, 2 }
  0x20   : > { %p556_p5 = pnand %p555_p3, %p549_p0 }
  0x21   : > { %v224_v8 = vadd.f32 %v223_v7, %v222_v6 }
  0x23   : > { %v225_v9 = vrot.slane %v224_v8, 1 }
  0x25   : > { %v226_v10 = vadd.f32 %v225_v9, %v224_v8 }
  0x27   : > { %v228_v11 = vmul.f32 0.125, %v226_v10 }
  0x29   : > { %v229_v12 = vsub.f32 %v218_v4, %v228_v11 }
  0x2b   : > { %v230_v13 = vmul.f32 %v229_v12, %v229_v12 }
  0x2d   : > { %v231_v14 = vrot.slane %v230_v13, 4 }
  0x2f   : > { %v232_v15 = vadd.f32 %v231_v14, %v230_v13 }
  0x31   : > { %v233_v16 = vrot.slane %v232_v15, 2 }
  0x33   : > { %v234_v17 = vadd.f32 %v233_v16, %v232_v15 }
  0x35   : > { %v235_v18 = vrot.slane %v234_v17, 1 }
  0x37   : > { %v236_v19 = vadd.f32 %v235_v18, %v234_v17 }
  0x39   : > { %v237_v20 = vmul.f32 0.125, %v236_v19 }
  0x3b   : > { %538 = vrsqrt.f32 %v237_v20  ;;  %vm240_vm1 = vcmp.eq.f32.partialorder %v237_v20, inf  ;;  %v243_v23 = vand.u32 2147483648, %v237_v20  ;;  %vm242_vm2 = vcmp.eq.f32.partialorder %v237_v20, 0.0 }
  0x45   : > { %v539_v21 = vpop.eup %538 }
  0x46   : > { %v239_v22 = vmul.f32 %v539_v21, %v237_v20 }
  0x48   : > { %v241_v24 = vsel %vm240_vm1, %v237_v20, %v239_v22 }
  0x49   : > { %v244_v25 = vsel %vm242_vm2, %v243_v23, %v241_v24 }
  0x4a   : > { %v245_v26 = vadd.f32 1e-06, %v244_v25 }
  0x4c   : > { %540 = vrcp.f32 %v245_v26 }
  0x56   : > { %v541_v27 = vpop.eup %540 }
  0x8f   : > { %v250_v28 = vpop.permute.xlu0 %249 }
  0x90   : > { %v252_v29 = vmul.f32 %v250_v28, %v229_v12 }
  0x92   : > { %v253_v30 = vmul.f32 %v541_v27, %v252_v29 }
  0x93   : > { %v257_v31 = vpop.permute.xlu0 %256 }
  0x94   : > { %v259_v32 = vadd.f32 %v257_v31, %v253_v30 }
  0x96   : > { %474 = vmatprep.subr.mxu0 %v259_v32 }
  0x97   : > { %475 = vmatpush3.msra.mxu0 %v259_v32 }
  0x98   : > { %477 = vmatmul.mubr.msk.f32.vlgmr.msra.gmra.mrb[0].mxu0 %vm262_vm0, %v261_v33 }
 0x16b   : > { %v478_v34 = vpop.f32.mrb[0].mxu0 }
 0x16c   : > { %v345_v35 = vmul.f32 %v478_v34, %v478_v34  ;;  %v335_v36 = vpop.f32.mrb[1].mxu0 }
 0x16d   : > { %v344_v37 = vmul.f32 %v335_v36, %v335_v36 }
 0x16e   : > { %v352_v38 = vrot.slane %v345_v35, 4 }
 0x16f   : > { %v346_v39 = vrot.slane %v344_v37, 4 }
 0x170   : > { %v353_v40 = vadd.f32 %v352_v38, %v345_v35 }
 0x171   : > { %v347_v41 = vadd.f32 %v346_v39, %v344_v37 }
 0x172   : > { %v354_v42 = vrot.slane %v353_v40, 2 }
 0x173   : > { %v348_v43 = vrot.slane %v347_v41, 2 }
 0x174   : > { %v355_v44 = vadd.f32 %v354_v42, %v353_v40 }
 0x175   : > { %v349_v45 = vadd.f32 %v348_v43, %v347_v41 }
 0x176   : > { %v356_v46 = vrot.slane %v355_v44, 1 }
 0x177   : > { %v350_v47 = vrot.slane %v349_v45, 1 }
 0x178   : > { %v357_v48 = vadd.f32 %v356_v46, %v355_v44 }
 0x179   : > { %v351_v49 = vadd.f32 %v350_v47, %v349_v45 }
 0x17a   : > { %v359_v50 = vmax.f32 %v357_v48, 1e-24 }
 0x17b   : > { %v358_v51 = vmax.f32 %v351_v49, 1e-24 }
 0x17c   : > { %542 = vrsqrt.f32 %v359_v50 }
 0x17d   : > { %544 = vrsqrt.f32 %v358_v51 }
 0x186   : > { %v543_v52 = vpop.eup %542 }
 0x187   : > { %v545_v53 = vpop.eup %544  ;;  %v363_v54 = vmul.f32 %v543_v52, %v478_v34 }
 0x188   : > { %v362_v55 = vmul.f32 %v545_v53, %v335_v36 }
 0x189   : > { %365 = vst [vmem:[%s210_s26 + $0x8] sm:$0xff] %v363_v54 }
 0x18a   : > { %364 = vst [vmem:[%s210_s26] sm:$0xff] %v362_v55 }
 0x18b   : > { %559 = shalt.err (!%p556_p5)
}
 0x18c   : > { %s560_s12 = scalar_lea.hbm %s736_s7, 256  ;;  %s564_s21 = scalar_lea.hbm %s788_s4, 512 }
 0x18d   : > { %p561_p6 = scmp.ne.s32.totalorder %s736_s7, %s560_s12  ;;  %p565_p10 = scmp.lt.u32.totalorder %s736_s7, %s788_s4 }
 0x18e   : > { %p566_p11 = scmp.lt.u32.totalorder %s564_s21, %s560_s12  ;;  %p568_p13 = scmp.lt.u32.totalorder %s560_s12, %s736_s7 }
 0x18f   : > { %p562_p7 = pnand %p561_p6, %p695_p4 }
 0x190   : > { %p567_p12 = por %p566_p11, %p565_p10 }
 0x191   : > { %p563_p9 = pneg %p562_p7 }
 0x192   : > { %p569_p0 = por %p568_p13, %p567_p12 }
 0x194   : > { %p570_p1 = pnand %p569_p0, %p563_p9 }
 0x196   : > { %573 = shalt.err (!%p570_p1)
}
 0x197   : > { %s628_s26 = smov 128   ;;  %s629_s30 = smov 8  }
 0x198   : > { %479 = dma.vmem_to_hbm [thread:$0]  (%p695_p4), %s731_s29, 256, %s736_s7, %s738_s8, %s628_s26, %s628_s26, %s629_s30  }
 0x199 PF: > { %p485_p2 = scmp.ge.s32.totalorder %s624_s20, 2  ;;  %s396_s5 = sand.u32 1, %s604_s15  }
 0x19a   : > { %s397_s6 = scalar_lea.sflag [#allocation3], %s396_s5 }
 0x19b   : > { %p482_p3 = pnand %p485_p2, %p702_p8 }
 0x19d   : > { %599 = dma.done.wait (!%p482_p3), %s397_s6, 256  }
 0x19e   : > { %601 = vsyncadd (!%p482_p3), %s397_s6, 4294967040  ;;  %s17_s20 = sadd.s32 1, %s624_s20   ;;  %s791_s15 = smov %s608_s16 }
 0x19f   : > { %p14_p5 = scmp.ge.s32.totalorder %s17_s20, 4   ;;  %s792_s16 = smov %s612_s17 }
 0x1a0   : > { %s793_s17 = smov %s708_s28  ;;  %s794_s18 = smov %s620_s19 }
 0x1a1   : > { %s795_s19 = smov %s797_s23  ;;  %16 = sbr.rel (!%p14_p5) target bundleno = 4 (0x4), region = 71 }
 0x1a8   :  { %402 = vsyncpa [#allocation3], 1 }
 0x1a9   :  { %404 = vsyncpa [#allocation3 + $0x1], 1 }

</bundles_post_ra>
